<compile_context>
chip_gen: v5e
topology: v5e:2x2
jax: 0.10.0
libtpu: 0.0.40
codegen_flags: <defaults>
</compile_context>

<pallas_src>
import functools

import numpy as np
import jax
import jax.numpy as jnp
from jax import lax
from jax.experimental import pallas as pl
from jax.experimental.pallas import tpu as pltpu

_NEG = -1e30   # finite "-inf" so empty batches cannot poison the gate with NaNs
_BIG = 1e30    # "infinite" distance for masked / padded candidates


def _round_up(x, m):
    return -(-x // m) * m


def _rep_spec(a):
    # full-array block that stays VMEM-resident across the whole grid
    return pl.BlockSpec(a.shape, lambda *_: (0,) * a.ndim)


# -----------------------------------------------------------------------------
# Kernel 1: BinaryReflectanceGate (point_nn MLP -> streaming global_max_pool ->
#           gate linear), tiled over N with N as a reduction axis.
# -----------------------------------------------------------------------------
def _gate_kernel(feats_ref, bcol_ref, w1_ref, b1_ref, w2_ref, b2_ref,
                 wg_ref, bg_ref, out_ref, pooled_ref, *, num_batches):
    i = pl.program_id(0)

    @pl.when(i == 0)
    def _():
        pooled_ref[...] = jnp.full(pooled_ref.shape, _NEG, jnp.float32)

    # point_nn: Linear(4,H) -> ReLU -> Linear(H,H) -> ReLU   (per point tile)
    h = jnp.maximum(jnp.dot(feats_ref[...], w1_ref[...],
                            preferred_element_type=jnp.float32) + b1_ref[...], 0.0)
    h = jnp.maximum(jnp.dot(h, w2_ref[...],
                            preferred_element_type=jnp.float32) + b2_ref[...], 0.0)

    # streaming global_max_pool: running per-batch max kept in VMEM scratch
    bcol = bcol_ref[...]                         # (tn, 1) int32, padded rows == -1
    hdim = h.shape[1]
    updates = []
    for bb in range(pooled_ref.shape[0]):        # small & static -> unrolled
        if bb < num_batches:
            m = bcol == bb
            updates.append(jnp.max(jnp.where(m, h, _NEG), axis=0, keepdims=True))
        else:
            updates.append(jnp.full((1, hdim), _NEG, jnp.float32))
    pooled_ref[...] = jnp.maximum(pooled_ref[...],
                                  jnp.concatenate(updates, axis=0))

    @pl.when(i == pl.num_programs(0) - 1)
    def _():
        pooled = pooled_ref[...][:num_batches]
        out_ref[...] = jnp.dot(pooled, wg_ref[...],
                               preferred_element_type=jnp.float32) + bg_ref[...]


def _reflectance_gate_logits(gp, feats, batch, num_batches):
    # TODO(synk): on v7x (2 TCs) a leading "parallel" axis over row super-chunks
    # with per-chunk pooled maxima + a tiny XLA reduce would shard this streaming
    # pass across both cores; single reduction axis is used here for simplicity.
    n = feats.shape[0]
    tn = min(2048, _round_up(n, 8))               # large tiles amortize step overhead
    n_pad = _round_up(n, tn)
    feats_p = jnp.pad(feats, ((0, n_pad - n), (0, 0)))
    bcol = jnp.full((n_pad, 1), -1, jnp.int32).at[:n, 0].set(batch.astype(jnp.int32))
    hdim = gp["w1"].shape[1]
    b_pad = _round_up(max(num_batches, 1), 8)
    weights = (gp["w1"], gp["b1"], gp["w2"], gp["b2"], gp["wg"], gp["bg"])
    kernel = functools.partial(_gate_kernel, num_batches=num_batches)
    return pl.pallas_call(
        kernel,
        out_shape=jax.ShapeDtypeStruct((num_batches, 2), jnp.float32),
        grid=(n_pad // tn,),
        in_specs=[pl.BlockSpec((tn, 4), lambda i: (i, 0)),
                  pl.BlockSpec((tn, 1), lambda i: (i, 0))] +
                 [_rep_spec(w) for w in weights],
        out_specs=pl.BlockSpec((num_batches, 2), lambda i: (0, 0)),
        scratch_shapes=[pltpu.VMEM((b_pad, hdim), jnp.float32)],
        compiler_params=pltpu.CompilerParams(
            dimension_semantics=("arbitrary",)),       # N axis is a reduction
    )(feats_p, bcol, *weights)


# -----------------------------------------------------------------------------
# Kernel 2: batch-masked pairwise distances fused with a streaming per-row top-k
# -----------------------------------------------------------------------------
def _knn_topk_kernel(y_ref, y2_ref, xT_ref, x2_ref, by_ref, bx_ref, out_ref,
                     bestv_ref, besti_ref, *, k, tile_n):
    j = pl.program_id(1)

    @pl.when(j == 0)
    def _():
        bestv_ref[...] = jnp.full(bestv_ref.shape, _BIG, jnp.float32)
        besti_ref[...] = jnp.zeros(besti_ref.shape, jnp.int32)

    # batch-masked squared distances for this (query tile, source tile).
    # ||y||^2 is precomputed in the wrapper (y2_ref) -> no per-tile recompute.
    d = y2_ref[...] + x2_ref[...] - 2.0 * jnp.dot(
        y_ref[...], xT_ref[...], preferred_element_type=jnp.float32)
    d = jnp.where(by_ref[...] == bx_ref[...], d, _BIG)        # (tm, tile_n)
    src_idx = j * tile_n + lax.broadcasted_iota(jnp.int32, d.shape, 1)

    INT_BIG = jnp.int32(2 ** 30)

    # ---- stage 1: k smallest inside this source tile --------------------------
    # 2 cross-lane reductions per pick: min value, then min index among ties.
    tile_v, tile_i = [], []
    for _ in range(k):
        m = jnp.min(d, axis=1, keepdims=True)                        # (tm, 1)
        i_sel = jnp.min(jnp.where(d == m, src_idx, INT_BIG),
                        axis=1, keepdims=True)                       # (tm, 1)
        tile_v.append(m)
        tile_i.append(i_sel)
        d = jnp.where((d == m) & (src_idx == i_sel), _BIG, d)        # drop winner
    tv = jnp.concatenate(tile_v, axis=1)                             # (tm, k)
    ti = jnp.concatenate(tile_i, axis=1)

    # ---- stage 2: merge tile winners with the running k-best (2k lanes wide) --
    cand_v = jnp.concatenate([bestv_ref[...], tv], axis=1)           # (tm, 2k)
    cand_i = jnp.concatenate([besti_ref[...], ti], axis=1)
    new_v, new_i = [], []
    for _ in range(k):
        m = jnp.min(cand_v, axis=1, keepdims=True)
        i_sel = jnp.min(jnp.where(cand_v == m, cand_i, INT_BIG),
                        axis=1, keepdims=True)
        new_v.append(m)
        new_i.append(i_sel)
        cand_v = jnp.where((cand_v == m) & (cand_i == i_sel), _BIG, cand_v)
    bestv_ref[...] = jnp.concatenate(new_v, axis=1)
    besti_ref[...] = jnp.concatenate(new_i, axis=1)

    @pl.when(j == pl.num_programs(1) - 1)
    def _():
        bv = bestv_ref[...]
        bi = besti_ref[...]
        # missing neighbors (batch has < k valid sources / padded query rows)
        # are flagged with -1 so the wrapper can keep them out of the max-agg.
        out_ref[...] = jnp.where(bv < _BIG * 0.5, bi, jnp.int32(-1))


def _knn_indices(pos_y, batch_y, pos_x, batch_x, *, k, tile_m):
    m = pos_y.shape[0]
    n = pos_x.shape[0]
    m_pad = _round_up(m, tile_m)
    tile_n = min(512, _round_up(n, 128))
    n_pad = _round_up(n, tile_n)

    y = jnp.pad(pos_y.astype(jnp.float32), ((0, m_pad - m), (0, 0)))
    y2 = jnp.sum(y * y, axis=1, keepdims=True)                # (m_pad, 1), hoisted
    by = jnp.full((m_pad, 1), -2, jnp.int32).at[:m, 0].set(batch_y.astype(jnp.int32))
    xs = jnp.pad(pos_x.astype(jnp.float32), ((0, n_pad - n), (0, 0)))
    xT = xs.T                                                 # (3, n_pad)
    x2 = jnp.sum(xs * xs, axis=1)[None, :]                    # (1, n_pad)
    bx = jnp.full((1, n_pad), -1, jnp.int32).at[0, :n].set(batch_x.astype(jnp.int32))

    kernel = functools.partial(_knn_topk_kernel, k=k, tile_n=tile_n)
    return pl.pallas_call(
        kernel,
        out_shape=jax.ShapeDtypeStruct((m_pad, k), jnp.int32),
        grid=(m_pad // tile_m, n_pad // tile_n),
        in_specs=[pl.BlockSpec((tile_m, 3), lambda i, j: (i, 0)),
                  pl.BlockSpec((tile_m, 1), lambda i, j: (i, 0)),
                  pl.BlockSpec((3, tile_n), lambda i, j: (0, j)),
                  pl.BlockSpec((1, tile_n), lambda i, j: (0, j)),
                  pl.BlockSpec((tile_m, 1), lambda i, j: (i, 0)),
                  pl.BlockSpec((1, tile_n), lambda i, j: (0, j))],
        out_specs=pl.BlockSpec((tile_m, k), lambda i, j: (i, 0)),
        scratch_shapes=[pltpu.VMEM((tile_m, k), jnp.float32),
                        pltpu.VMEM((tile_m, k), jnp.int32)],
        compiler_params=pltpu.CompilerParams(
            dimension_semantics=("parallel", "arbitrary")),
    )(y, y2, xT, x2, by, bx)


# -----------------------------------------------------------------------------
# Kernel 3: fused PointNet-style conv (message MLP + max over k) + residual block
# -----------------------------------------------------------------------------
def _conv_residual_kernel(msg_ref, cw1_ref, cb1_ref, cw2_ref, cb2_ref,
                          we_ref, be_ref, d1s_ref, d1t_ref, p1w_ref, p1b_ref,
                          d2s_ref, d2t_ref, p2w_ref, p2b_ref, wp_ref, bp_ref,
                          out_ref, *, k):
    # TODO(synk): AttentivePointNetConv / KAN are not defined in the source; a
    # standard 2-layer MLP local_nn with max aggregation is used as the stand-in.
    bf16 = jnp.bfloat16
    _, tm, nn0 = msg_ref.shape
    # one long-M matmul over all k neighbor slabs; leading-dim reshape is free
    # (block is contiguous, tm is a multiple of 8) -> no extra VMEM copy.
    flat = msg_ref[...].reshape(k * tm, nn0)                          # bf16
    h = jnp.maximum(jnp.dot(flat, cw1_ref[...],
                            preferred_element_type=jnp.float32) + cb1_ref[...], 0.0)
    h = jnp.maximum(jnp.dot(h.astype(bf16), cw2_ref[...],
                            preferred_element_type=jnp.float32) + cb2_ref[...], 0.0)
    agg = h[0:tm]
    for i in range(1, k):                                             # VPU max over k
        agg = jnp.maximum(agg, h[i * tm:(i + 1) * tm])                # (tm, RNN) f32

    # InvertedResidualBlock (all 1x1 convs; eval-mode BN folded; identity shortcut)
    # Matmuls take bf16 operands for the MXU; elementwise math stays f32.
    x0 = agg
    r = jnp.maximum(jnp.dot(x0.astype(bf16), we_ref[...],
                            preferred_element_type=jnp.float32) + be_ref[...], 0.0)
    r = jnp.maximum(r * d1s_ref[...] + d1t_ref[...], 0.0)             # DSConv1 depthwise
    r = jnp.dot(r.astype(bf16), p1w_ref[...],
                preferred_element_type=jnp.float32) + p1b_ref[...]
    r = jnp.maximum(r * d2s_ref[...] + d2t_ref[...], 0.0)             # DSConv2 depthwise
    r = jnp.dot(r.astype(bf16), p2w_ref[...],
                preferred_element_type=jnp.float32) + p2b_ref[...]
    r = jnp.dot(r.astype(bf16), wp_ref[...],
                preferred_element_type=jnp.float32) + bp_ref[...]
    out_ref[...] = jnp.maximum(r + x0, 0.0)


def _conv_residual(pc, pr, msg, *, tile_m):
    k, m_pad, nn0 = msg.shape
    rnn = pr["wp"].shape[1]
    bf = lambda a: a.astype(jnp.bfloat16)
    weights = (bf(pc["w1"]), pc["b1"], bf(pc["w2"]), pc["b2"],
               bf(pr["we"]), pr["be"], pr["d1s"], pr["d1t"],
               bf(pr["p1w"]), pr["p1b"],
               pr["d2s"], pr["d2t"], bf(pr["p2w"]), pr["p2b"],
               bf(pr["wp"]), pr["bp"])
    kernel = functools.partial(_conv_residual_kernel, k=k)
    # TODO(synk): fuse the neighbor gather into this kernel (scalar-prefetched
    # nbr rows + manual DMA row gather) to avoid materializing msg in HBM at all;
    # a lane-dense (m_pad//4, 128) output slab would also avoid masked stores on
    # the 32-wide output if profiling shows it store-bound.
    return pl.pallas_call(
        kernel,
        out_shape=jax.ShapeDtypeStruct((m_pad, rnn), jnp.float32),
        grid=(m_pad // tile_m,),
        in_specs=[pl.BlockSpec((k, tile_m, nn0), lambda i: (0, i, 0))] +
                 [_rep_spec(w) for w in weights],
        out_specs=pl.BlockSpec((tile_m, rnn), lambda i: (i, 0)),
        compiler_params=pltpu.CompilerParams(
            dimension_semantics=("parallel",)),      # row axis -> both TCs on v7x
    )(msg, *weights)


# -----------------------------------------------------------------------------
# Parameter init (deterministic, mirrors the module __init__ shapes)
# -----------------------------------------------------------------------------
def _init_linear(key, fin, fout):
    k1, k2 = jax.random.split(key)
    bound = 1.0 / np.sqrt(fin)
    w = jax.random.uniform(k1, (fin, fout), jnp.float32, -bound, bound)
    b = jax.random.uniform(k2, (1, fout), jnp.float32, -bound, bound)
    return w, b


def make_params(key, NN, RNN, temperature=1.0):
    assert NN[2] == RNN, "identity shortcut requires conv output dim == RNN"
    H = NN[0]
    keys = jax.random.split(key, 16)

    # BinaryReflectanceGate(hidden_dim=NN[0])
    w1, b1 = _init_linear(keys[0], 4, H)
    w2, b2 = _init_linear(keys[1], H, H)
    wg, _ = _init_linear(keys[2], H, 2)
    bg = jnp.array([[0.0, 2.0]], jnp.float32)        # gate_nn.bias.data = [0, 2]
    gate = dict(w1=w1, b1=b1, w2=w2, b2=b2, wg=wg, bg=bg)

    # local_nn stand-in for KAN(NN): Linear(NN0,NN1)+ReLU, Linear(NN1,NN2)+ReLU
    cw1, cb1 = _init_linear(keys[3], NN[0], NN[1])
    cw2, cb2 = _init_linear(keys[4], NN[1], NN[2])
    conv = dict(w1=cw1, b1=cb1, w2=cw2, b2=cb2)

    # InvertedResidualBlock(RNN, RNN, expansion_factor=4); BN in eval mode with
    # default init (gamma=1, beta=0, mean=0, var=1) -> fused scale 1/sqrt(1+eps)
    C, E = RNN, RNN * 4
    bnf = jnp.float32(1.0 / np.sqrt(1.0 + 1e-5))
    we, be = _init_linear(keys[5], C, E)
    dw1 = jax.random.uniform(keys[6], (1, E), jnp.float32, -1.0, 1.0)
    db1 = jax.random.uniform(keys[7], (1, E), jnp.float32, -1.0, 1.0)
    pw1, pb1 = _init_linear(keys[8], E, E)
    dw2 = jax.random.uniform(keys[9], (1, E), jnp.float32, -1.0, 1.0)
    db2 = jax.random.uniform(keys[10], (1, E), jnp.float32, -1.0, 1.0)
    pw2, pb2 = _init_linear(keys[11], E, E)
    wp, bp = _init_linear(keys[12], E, C)
    res = dict(
        we=we * bnf, be=be * bnf,                    # expand conv (+BN)
        d1s=dw1 * bnf, d1t=db1 * bnf,                # depthwise1 (+BN)
        p1w=pw1 * bnf * bnf, p1b=pb1 * bnf * bnf,    # pointwise1 (+pw BN +outer BN)
        d2s=dw2 * bnf, d2t=db2 * bnf,
        p2w=pw2 * bnf * bnf, p2b=pb2 * bnf * bnf,
        wp=wp * bnf, bp=bp * bnf,                    # project conv (+BN)
    )
    return dict(gate=gate, conv=conv, res=res,
                temperature=float(temperature),
                gumbel_key=keys[13])


# -----------------------------------------------------------------------------
# Glue: voxel sampling (voxel_grid + consecutive_cluster), vectorized on host
# -----------------------------------------------------------------------------
def _voxelsample(pos_np, batch_np, resolution):
    # One representative index per occupied voxel, ordered by voxel id
    # ("last write wins").  Output size is data dependent -> cannot live in jit.
    # TODO(synk): forces a device->host sync mid-forward; a jit-friendly variant
    # needs a static upper bound on the number of occupied voxels.
    v = np.floor(pos_np / resolution).astype(np.int64)
    v -= v.min(axis=0, keepdims=True)
    dims = v.max(axis=0) + 1
    vid = (((batch_np.astype(np.int64) * dims[0] + v[:, 0]) * dims[1] + v[:, 1])
           * dims[2] + v[:, 2])
    n = vid.shape[0]
    _, rev_first = np.unique(vid[::-1], return_index=True)
    return jnp.asarray((n - 1 - rev_first).astype(np.int32))


# -----------------------------------------------------------------------------
# SAModule.forward
# -----------------------------------------------------------------------------
def sa_module_forward(params, x, pos, batch, reflectance, *,
                      resolution, k, num_batches, rng_key=None):
    n = pos.shape[0]
    pos3 = pos[:, :3].astype(jnp.float32)
    if reflectance is None:
        # TODO(synk): the reference module would crash here (unsqueeze on None);
        # an all-zero reflectance keeps the gate inactive instead.
        reflectance = jnp.zeros((n,), jnp.float32)
    reflectance = reflectance.astype(jnp.float32)
    gkey = params["gumbel_key"] if rng_key is None else rng_key

    # --- BinaryReflectanceGate (logits always computed; gating applied through a
    # traced predicate so there is no data-dependent host branch) --------------
    feats = jnp.concatenate([pos3, reflectance[:, None]], axis=-1)    # (N, 4)
    logits = _reflectance_gate_logits(params["gate"], feats, batch, num_batches)
    gumbel = -jnp.log(jax.random.exponential(gkey, logits.shape))
    gate = jax.nn.softmax((logits + gumbel) / params["temperature"], axis=-1)
    apply_gate = jnp.abs(reflectance).mean() > 1e-6
    reflectance = jnp.where(apply_gate, gate[:, 1][batch], 1.0) * reflectance

    pos_with_refl = (jnp.concatenate([pos, reflectance[:, None]], axis=-1)
                     if pos.shape[1] == 3 else pos)

    # --- voxel sampling (index bookkeeping, dynamic output size) --------------
    idx = _voxelsample(np.asarray(pos3), np.asarray(batch), resolution)
    m = int(idx.shape[0])
    tile_m = min(512, _round_up(m, 8))
    m_pad = _round_up(m, tile_m)

    # --- knn with fused streaming top-k (never materializes the (M, N) matrix) -
    nbr = _knn_indices(pos3[idx], batch[idx], pos3, batch, k=k, tile_m=tile_m)
    # missing neighbors (-1) duplicate the nearest valid one so the max-agg never
    # mixes in cross-batch points; padded query rows are dropped at the end.
    first = nbr[:, :1]
    nbr = jnp.where(nbr >= 0, nbr, first)
    nbr = jnp.clip(nbr, 0, n - 1)

    # --- message construction (gathers stay in XLA; built directly in the
    # (k, Mpad, NN0) bf16 layout the conv kernel wants -> half the HBM traffic
    # on the largest intermediate and no transpose of the big msg)
    idx_pad = jnp.pad(idx, (0, m_pad - m))
    ctr = pos_with_refl[idx_pad]                       # (m_pad, 4) sampled centers
    nbr_t = nbr.T                                      # (k, m_pad)
    rel = pos_with_refl[nbr_t] - ctr[None, :, :]       # relative coords in f32
    msg = jnp.concatenate([x[nbr_t].astype(jnp.bfloat16),
                           rel.astype(jnp.bfloat16)], axis=-1)   # (k, m_pad, NN0)

    # --- fused AttentivePointNetConv stand-in + InvertedResidualBlock ---------
    out = _conv_residual(params["conv"], params["res"], msg, tile_m=tile_m)[:m]

    return out, pos3[idx], batch[idx], reflectance[idx]


# -----------------------------------------------------------------------------
if __name__ == "__main__":
    NN = [8, 16, 32]      # -> in_channels = max(1, NN[0]-4) = 4, gate hidden = 8
    RNN = 32
    resolution = 0.6
    k = 4
    B = 2
    N = 64

    key = jax.random.PRNGKey(0)
    kp, kx, kpos, kr, kg = jax.random.split(key, 5)
    params = make_params(kp, NN, RNN, temperature=1.0)

    x = jax.random.normal(kx, (N, max(1, NN[0] - 4)), jnp.float32)
    pos = jax.random.uniform(kpos, (N, 3), jnp.float32, 0.0, 2.0)
    reflectance = jax.random.uniform(kr, (N,), jnp.float32, 0.1, 1.0)
    batch = jnp.concatenate([jnp.zeros(N // 2, jnp.int32),
                             jnp.ones(N // 2, jnp.int32)])

    out_x, out_pos, out_batch, out_refl = sa_module_forward(
        params, x, pos, batch, reflectance,
        resolution=resolution, k=k, num_batches=B, rng_key=kg)
    jax.block_until_ready((out_x, out_pos, out_batch, out_refl))

    M = out_pos.shape[0]
    assert out_x.shape == (M, RNN)
    assert out_pos.shape == (M, 3)
    assert out_batch.shape == (M,)
    assert out_refl.shape == (M,)
    assert bool(jnp.all(jnp.isfinite(out_x)))
    print("KERNEL_OK")
</pallas_src>

<mosaic_0001>
module attributes {stable_mosaic.version = 11 : i64} {
  func.func @_gate_kernel(%arg0: i32, %arg1: memref<64x4xf32, #tpu.memory_space<vmem>>, %arg2: memref<64x1xi32, #tpu.memory_space<vmem>>, %arg3: memref<4x8xf32, #tpu.memory_space<vmem>>, %arg4: memref<1x8xf32, #tpu.memory_space<vmem>>, %arg5: memref<8x8xf32, #tpu.memory_space<vmem>>, %arg6: memref<1x8xf32, #tpu.memory_space<vmem>>, %arg7: memref<8x2xf32, #tpu.memory_space<vmem>>, %arg8: memref<1x2xf32, #tpu.memory_space<vmem>>, %arg9: memref<2x2xf32, #tpu.memory_space<vmem>>, %arg10: memref<8x8xf32, #tpu.memory_space<vmem>>) attributes {dimension_semantics = [#tpu.dimension_semantics<arbitrary>], iteration_bounds = array<i64: 1>, scalar_prefetch = 0 : i64, scratch_operands = 1 : i64, tpu.core_type = #tpu.core_type<tc>, window_params = [{transform_indices = @transform_0, window_bounds = array<i64: 64, 4>}, {transform_indices = @transform_1, window_bounds = array<i64: 64, 1>}, {pipeline_mode = #tpu.pipeline_mode<synchronous>, transform_indices = @transform_2, window_bounds = array<i64: 4, 8>}, {pipeline_mode = #tpu.pipeline_mode<synchronous>, transform_indices = @transform_3, window_bounds = array<i64: 1, 8>}, {pipeline_mode = #tpu.pipeline_mode<synchronous>, transform_indices = @transform_4, window_bounds = array<i64: 8, 8>}, {pipeline_mode = #tpu.pipeline_mode<synchronous>, transform_indices = @transform_5, window_bounds = array<i64: 1, 8>}, {pipeline_mode = #tpu.pipeline_mode<synchronous>, transform_indices = @transform_6, window_bounds = array<i64: 8, 2>}, {pipeline_mode = #tpu.pipeline_mode<synchronous>, transform_indices = @transform_7, window_bounds = array<i64: 1, 2>}, {pipeline_mode = #tpu.pipeline_mode<synchronous>, transform_indices = @transform_8, window_bounds = array<i64: 2, 2>}]} {
    %c0_i32 = arith.constant 0 : i32
    %0 = arith.cmpi eq, %arg0, %c0_i32 : i32
    %1 = arith.extui %0 : i1 to i32
    %c0_i32_0 = arith.constant 0 : i32
    %2 = arith.cmpi ne, %1, %c0_i32_0 : i32
    scf.if %2 {
      %cst_32 = arith.constant -1.000000e+30 : f32
      %48 = vector.broadcast %cst_32 : f32 to vector<8x8xf32>
      %c0_33 = arith.constant 0 : index
      %c0_34 = arith.constant 0 : index
      %49 = vector.load %arg10[%c0_33, %c0_34] : memref<8x8xf32, #tpu.memory_space<vmem>>, vector<8x8xf32>
      tpu.vector_store %arg10[%c0_33, %c0_34], %48 {strides = array<i32>} : memref<8x8xf32, #tpu.memory_space<vmem>>, vector<8x8xf32>,
    } else {
    }
    %c0 = arith.constant 0 : index
    %c0_1 = arith.constant 0 : index
    %3 = vector.load %arg1[%c0, %c0_1] : memref<64x4xf32, #tpu.memory_space<vmem>>, vector<64x4xf32>
    %c0_2 = arith.constant 0 : index
    %c0_3 = arith.constant 0 : index
    %4 = vector.load %arg3[%c0_2, %c0_3] : memref<4x8xf32, #tpu.memory_space<vmem>>, vector<4x8xf32>
    %cst = arith.constant dense<0.000000e+00> : vector<64x8xf32>
    %5 = tpu.matmul %3, %4, %cst {dimension_numbers = #tpu.dot_dimension_numbers<[1], [0], [0], [1], [0, 0, 1, 1], [], []>} : vector<64x4xf32>, vector<4x8xf32>, vector<64x8xf32> -> vector<64x8xf32>
    %c0_4 = arith.constant 0 : index
    %c0_5 = arith.constant 0 : index
    %6 = vector.load %arg4[%c0_4, %c0_5] : memref<1x8xf32, #tpu.memory_space<vmem>>, vector<1x8xf32>
    %7 = vector.broadcast %6 : vector<1x8xf32> to vector<64x8xf32>
    %8 = arith.addf %5, %7 : vector<64x8xf32>
    %cst_6 = arith.constant 0.000000e+00 : f32
    %9 = vector.broadcast %cst_6 : f32 to vector<64x8xf32>
    %10 = arith.maximumf %8, %9 : vector<64x8xf32>
    %c0_7 = arith.constant 0 : index
    %c0_8 = arith.constant 0 : index
    %11 = vector.load %arg5[%c0_7, %c0_8] : memref<8x8xf32, #tpu.memory_space<vmem>>, vector<8x8xf32>
    %cst_9 = arith.constant dense<0.000000e+00> : vector<64x8xf32>
    %12 = tpu.matmul %10, %11, %cst_9 {dimension_numbers = #tpu.dot_dimension_numbers<[1], [0], [0], [1], [0, 0, 1, 1], [], []>} : vector<64x8xf32>, vector<8x8xf32>, vector<64x8xf32> -> vector<64x8xf32>
    %c0_10 = arith.constant 0 : index
    %c0_11 = arith.constant 0 : index
    %13 = vector.load %arg6[%c0_10, %c0_11] : memref<1x8xf32, #tpu.memory_space<vmem>>, vector<1x8xf32>
    %14 = vector.broadcast %13 : vector<1x8xf32> to vector<64x8xf32>
    %15 = arith.addf %12, %14 : vector<64x8xf32>
    %cst_12 = arith.constant 0.000000e+00 : f32
    %16 = vector.broadcast %cst_12 : f32 to vector<64x8xf32>
    %17 = arith.maximumf %15, %16 : vector<64x8xf32>
    %c0_13 = arith.constant 0 : index
    %c0_14 = arith.constant 0 : index
    %18 = vector.load %arg2[%c0_13, %c0_14] : memref<64x1xi32, #tpu.memory_space<vmem>>, vector<64x1xi32>
    %c0_i32_15 = arith.constant 0 : i32
    %19 = vector.broadcast %c0_i32_15 : i32 to vector<64x1xi32>
    %20 = arith.cmpi eq, %18, %19 : vector<64x1xi32>
    %cst_16 = arith.constant -1.000000e+30 : f32
    %21 = vector.shape_cast %20 : vector<64x1xi1> to vector<64x1xi1>
    %22 = vector.broadcast %21 : vector<64x1xi1> to vector<64x8xi1>
    %23 = vector.broadcast %cst_16 : f32 to vector<64x8xf32>
    %24 = arith.select %22, %17, %23 : vector<64x8xi1>, vector<64x8xf32>
    %cst_17 = arith.constant dense<0xFF800000> : vector<8xf32>
    %25 = vector.multi_reduction <maximumf>, %24, %cst_17 [0] : vector<64x8xf32> to vector<8xf32>
    %26 = vector.shape_cast %25 : vector<8xf32> to vector<1x8xf32>
    %c1_i32 = arith.constant 1 : i32
    %27 = vector.broadcast %c1_i32 : i32 to vector<64x1xi32>
    %28 = arith.cmpi eq, %18, %27 : vector<64x1xi32>
    %cst_18 = arith.constant -1.000000e+30 : f32
    %29 = vector.shape_cast %28 : vector<64x1xi1> to vector<64x1xi1>
    %30 = vector.broadcast %29 : vector<64x1xi1> to vector<64x8xi1>
    %31 = vector.broadcast %cst_18 : f32 to vector<64x8xf32>
    %32 = arith.select %30, %17, %31 : vector<64x8xi1>, vector<64x8xf32>
    %cst_19 = arith.constant dense<0xFF800000> : vector<8xf32>
    %33 = vector.multi_reduction <maximumf>, %32, %cst_19 [0] : vector<64x8xf32> to vector<8xf32>
    %34 = vector.shape_cast %33 : vector<8xf32> to vector<1x8xf32>
    %cst_20 = arith.constant -1.000000e+30 : f32
    %35 = vector.broadcast %cst_20 : f32 to vector<1x8xf32>
    %cst_21 = arith.constant -1.000000e+30 : f32
    %36 = vector.broadcast %cst_21 : f32 to vector<1x8xf32>
    %cst_22 = arith.constant -1.000000e+30 : f32
    %37 = vector.broadcast %cst_22 : f32 to vector<1x8xf32>
    %cst_23 = arith.constant -1.000000e+30 : f32
    %38 = vector.broadcast %cst_23 : f32 to vector<1x8xf32>
    %cst_24 = arith.constant -1.000000e+30 : f32
    %39 = vector.broadcast %cst_24 : f32 to vector<1x8xf32>
    %cst_25 = arith.constant -1.000000e+30 : f32
    %40 = vector.broadcast %cst_25 : f32 to vector<1x8xf32>
    %c0_26 = arith.constant 0 : index
    %c0_27 = arith.constant 0 : index
    %41 = vector.load %arg10[%c0_26, %c0_27] : memref<8x8xf32, #tpu.memory_space<vmem>>, vector<8x8xf32>
    %42 = tpu.concatenate %26, %34, %35, %36, %37, %38, %39, %40 in 0 : vector<1x8xf32>, vector<1x8xf32>, vector<1x8xf32>, vector<1x8xf32>, vector<1x8xf32>, vector<1x8xf32>, vector<1x8xf32>, vector<1x8xf32> -> vector<8x8xf32>
    %43 = arith.maximumf %41, %42 : vector<8x8xf32>
    %c0_28 = arith.constant 0 : index
    %c0_29 = arith.constant 0 : index
    %44 = vector.load %arg10[%c0_28, %c0_29] : memref<8x8xf32, #tpu.memory_space<vmem>>, vector<8x8xf32>
    tpu.vector_store %arg10[%c0_28, %c0_29], %43 {strides = array<i32>} : memref<8x8xf32, #tpu.memory_space<vmem>>, vector<8x8xf32>,
    %c0_i32_30 = arith.constant 0 : i32
    %45 = arith.cmpi eq, %arg0, %c0_i32_30 : i32
    %46 = arith.extui %45 : i1 to i32
    %c0_i32_31 = arith.constant 0 : i32
    %47 = arith.cmpi ne, %46, %c0_i32_31 : i32
    scf.if %47 {
      %c0_32 = arith.constant 0 : index
      %c0_33 = arith.constant 0 : index
      %48 = vector.load %arg10[%c0_32, %c0_33] : memref<8x8xf32, #tpu.memory_space<vmem>>, vector<8x8xf32>
      %49 = vector.extract_strided_slice %48 {offsets = [0, 0], sizes = [2, 8], strides = [1, 1]} : vector<8x8xf32> to vector<2x8xf32>
      %c0_34 = arith.constant 0 : index
      %c0_35 = arith.constant 0 : index
      %50 = vector.load %arg7[%c0_34, %c0_35] : memref<8x2xf32, #tpu.memory_space<vmem>>, vector<8x2xf32>
      %cst_36 = arith.constant dense<0.000000e+00> : vector<2x2xf32>
      %51 = tpu.matmul %49, %50, %cst_36 {dimension_numbers = #tpu.dot_dimension_numbers<[1], [0], [0], [1], [0, 0, 1, 1], [], []>} : vector<2x8xf32>, vector<8x2xf32>, vector<2x2xf32> -> vector<2x2xf32>
      %c0_37 = arith.constant 0 : index
      %c0_38 = arith.constant 0 : index
      %52 = vector.load %arg8[%c0_37, %c0_38] : memref<1x2xf32, #tpu.memory_space<vmem>>, vector<1x2xf32>
      %53 = vector.broadcast %52 : vector<1x2xf32> to vector<2x2xf32>
      %54 = arith.addf %51, %53 : vector<2x2xf32>
      %c0_39 = arith.constant 0 : index
      %c0_40 = arith.constant 0 : index
      %55 = vector.load %arg9[%c0_39, %c0_40] : memref<2x2xf32, #tpu.memory_space<vmem>>, vector<2x2xf32>
      tpu.vector_store %arg9[%c0_39, %c0_40], %54 {strides = array<i32>} : memref<2x2xf32, #tpu.memory_space<vmem>>, vector<2x2xf32>,
    } else {
    }
    return
  }
  func.func @transform_0(%arg0: i32) -> (i32, i32) {
    %c0_i32 = arith.constant 0 : i32
    %c0_i32_0 = arith.constant 0 : i32
    return %arg0, %c0_i32 : i32, i32
  }
  func.func @transform_1(%arg0: i32) -> (i32, i32) {
    %c0_i32 = arith.constant 0 : i32
    %c0_i32_0 = arith.constant 0 : i32
    return %arg0, %c0_i32 : i32, i32
  }
  func.func @transform_2(%arg0: i32) -> (i32, i32) {
    %c0_i32 = arith.constant 0 : i32
    %c0_i32_0 = arith.constant 0 : i32
    %c0_i32_1 = arith.constant 0 : i32
    return %c0_i32, %c0_i32_0 : i32, i32
  }
  func.func @transform_3(%arg0: i32) -> (i32, i32) {
    %c0_i32 = arith.constant 0 : i32
    %c0_i32_0 = arith.constant 0 : i32
    %c0_i32_1 = arith.constant 0 : i32
    return %c0_i32, %c0_i32_0 : i32, i32
  }
  func.func @transform_4(%arg0: i32) -> (i32, i32) {
    %c0_i32 = arith.constant 0 : i32
    %c0_i32_0 = arith.constant 0 : i32
    %c0_i32_1 = arith.constant 0 : i32
    return %c0_i32, %c0_i32_0 : i32, i32
  }
  func.func @transform_5(%arg0: i32) -> (i32, i32) {
    %c0_i32 = arith.constant 0 : i32
    %c0_i32_0 = arith.constant 0 : i32
    %c0_i32_1 = arith.constant 0 : i32
    return %c0_i32, %c0_i32_0 : i32, i32
  }
  func.func @transform_6(%arg0: i32) -> (i32, i32) {
    %c0_i32 = arith.constant 0 : i32
    %c0_i32_0 = arith.constant 0 : i32
    %c0_i32_1 = arith.constant 0 : i32
    return %c0_i32, %c0_i32_0 : i32, i32
  }
  func.func @transform_7(%arg0: i32) -> (i32, i32) {
    %c0_i32 = arith.constant 0 : i32
    %c0_i32_0 = arith.constant 0 : i32
    %c0_i32_1 = arith.constant 0 : i32
    return %c0_i32, %c0_i32_0 : i32, i32
  }
  func.func @transform_8(%arg0: i32) -> (i32, i32) {
    %c0_i32 = arith.constant 0 : i32
    %c0_i32_0 = arith.constant 0 : i32
    %c0_i32_1 = arith.constant 0 : i32
    return %c0_i32, %c0_i32_0 : i32, i32
  }
}

</mosaic_0001>

<bundles_post_ra>
// kernel: tpu_custom_call.1
= control target key start
LH: loop header
LB: loop body
LE: loop exit
PB: predicated region body
PF: predicated region fallthrough
CT: control target
= control target key end

     0   :  { %vm721_vm0 = vcmask 1043456   ;;  %vm49_vm1 = vcmask 31744   ;;  %v489_v3 = vmov 0   ;;  %s712_s0 = inlined_call_operand.vmem [shape: f32[64,4], index: 0, kind: input, shape index: {}]   ;;  %s713_s1 = inlined_call_operand.vmem [shape: s32[64,1], index: 1, kind: input, shape index: {}]   ;;  %s714_s2 = inlined_call_operand.vmem [shape: f32[4,8], index: 2, kind: input, shape index: {}]   ;;  %s715_s3 = inlined_call_operand.vmem [shape: f32[1,8], index: 3, kind: input, shape index: {}]   ;;  %s716_s4 = inlined_call_operand.vmem [shape: f32[8,8], index: 4, kind: input, shape index: {}]   ;;  %s717_s5 = inlined_call_operand.vmem [shape: f32[1,8], index: 5, kind: input, shape index: {}]   ;;  %s718_s6 = inlined_call_operand.vmem [shape: f32[8,2], index: 6, kind: input, shape index: {}]   ;;  %s719_s7 = inlined_call_operand.vmem [shape: f32[1,2], index: 7, kind: input, shape index: {}]   ;;  %s720_s8 = inlined_call_operand.hbm [shape: f32[2,2], index: 8, kind: output, shape index: {}]  }
   0x1   :  { %v44_v0 = vld [vmem:[%s714_s2] sm:$0xf]  ;;  %v41_v2 = vld [vmem:[%s712_s0 + $0x28] sm:$0xff]  ;;  %457 = vset.pattern.permute.xlu0 %v489_v3  ;;  %458 = vset.pattern.permute.xlu1 %v489_v3  ;;  %v208_v5 = vld [vmem:[%s713_s1 + $0x10] sm:$0xff] }
   0x2   :  { %v36_v1 = vld [vmem:[%s712_s0] sm:$0xff]  ;;  %434 = vmatpush.msk.msra.mxu0 %vm721_vm0, %v44_v0  ;;  %452 = vmatpush.msk.msra.mxu3 %vm721_vm0, %v44_v0  ;;  %vm216_vm3 = vcmp.eq.s32.totalorder %v208_v5, 0  ;;  %v207_v7 = vld [vmem:[%s713_s1 + $0x8] sm:$0xff]  ;;  %v570_v9 = vld [vmem:[%s713_s1 + $0x18] sm:$0xff] }
   0x3   :  { %435 = vmatmul.msk.f32.vlgmr.msra.gmra.mxu0 %vm49_vm1, %v36_v1  ;;  %440 = vmatmul.msk.f32.vlgmr.msra.gmra.mxu3 %vm49_vm1, %v41_v2  ;;  %v554_v4 = vld [vmem:[%s713_s1] sm:$0xff]  ;;  %v224_v8 = vsel %vm216_vm3, 1, %v489_v3  ;;  %v37_v10 = vld [vmem:[%s712_s0 + $0x8] sm:$0xff]  ;;  %v42_v11 = vld [vmem:[%s712_s0 + $0x30] sm:$0xff]  ;;  %vm215_vm4 = vcmp.eq.s32.totalorder %v207_v7, 0  ;;  %vm217_vm5 = vcmp.eq.s32.totalorder %v570_v9, 0 }
   0x4   :  { %vm214_vm2 = vcmp.eq.s32.totalorder %v554_v4, 0  ;;  %459 = vset.pattern.permute.xlu2 %v489_v3  ;;  %237 = vperm.xlu1 %458, %v224_v8  }
   0x5   :  { %v222_v6 = vsel %vm214_vm2, 1, %v489_v3 }
   0x6   :  { %231 = vperm.xlu0 %457, %v222_v6  }
   0x7   :  { %13 = vsyncpa [#allocation4], 0  ;;  %v223_v12 = vsel %vm215_vm4, 1, %v489_v3  ;;  %v225_v13 = vsel %vm217_vm5, 1, %v489_v3  ;;  %v212_v14 = vld [vmem:[%s713_s1 + $0x30] sm:$0xff]  ;;  %v43_v16 = vld [vmem:[%s712_s0 + $0x38] sm:$0xff] }
   0x8   :  { %v38_v15 = vld [vmem:[%s712_s0 + $0x10] sm:$0xff]  ;;  %vm220_vm6 = vcmp.eq.s32.totalorder %v212_v14, 0  ;;  %v39_v18 = vld [vmem:[%s712_s0 + $0x18] sm:$0xff]  ;;  %vm292_vm7 = vcmp.eq.s32.totalorder %v207_v7, 1  ;;  %v40_v20 = vld [vmem:[%s712_s0 + $0x20] sm:$0xff]  ;;  %vm293_vm11 = vcmp.eq.s32.totalorder %v208_v5, 1 }
   0x9   :  { %v228_v17 = vsel %vm220_vm6, 1, %v489_v3  ;;  %v300_v19 = vsel %vm292_vm7, 1, %v489_v3  ;;  %v213_v21 = vld [vmem:[%s713_s1 + $0x38] sm:$0xff]  ;;  %v210_v22 = vld [vmem:[%s713_s1 + $0x20] sm:$0xff]  ;;  %v301_v27 = vsel %vm293_vm11, 1, %v489_v3  ;;  %v211_v29 = vld [vmem:[%s713_s1 + $0x28] sm:$0xff] }
   0xa   :  { %vm221_vm8 = vcmp.eq.s32.totalorder %v213_v21, 0  ;;  %vm295_vm9 = vcmp.eq.s32.totalorder %v210_v22, 1  ;;  %v127_v25 = vld [vmem:[%s716_s4] sm:$0xff]  ;;  %vm218_vm10 = vcmp.eq.s32.totalorder %v210_v22, 0  ;;  %vm298_vm12 = vcmp.eq.s32.totalorder %v213_v21, 1  ;;  %s491_s19 = smov [#allocation3]  }
   0xb   :  { %436 = vmatmul.msk.f32.gmra.mxu0 %vm49_vm1, %v37_v10  ;;  %441 = vmatmul.msk.f32.gmra.mxu3 %vm49_vm1, %v42_v11  ;;  %v229_v23 = vsel %vm221_vm8, 1, %v489_v3  ;;  %v303_v24 = vsel %vm295_vm9, 1, %v489_v3  ;;  %v226_v26 = vsel %vm218_vm10, 1, %v489_v3  ;;  %v306_v28 = vsel %vm298_vm12, 1, %v489_v3  ;;  %v460_v33 = vld [vmem:[%s715_s3] ss:$0 sm:$0xff] }
   0xc   :  { %240 = vperm.xlu1 %458, %v225_v13   ;;  %172 = vmatpush.msra.mxu1 %v127_v25  ;;  %vm219_vm13 = vcmp.eq.s32.totalorder %v211_v29, 0  ;;  %vm296_vm14 = vcmp.eq.s32.totalorder %v211_v29, 1  ;;  %vm291_vm15 = vcmp.eq.s32.totalorder %v554_v4, 1  ;;  %vm34_vm2 = vcmask 64512   ;;  %s423_s20 = sshll.u32 %s491_s19, 4  ;;  %s425_s23 = sshll.u32 %s720_s8, 4  ;;  %s424_s20 = int_to_ptr.vmem [resolvable:$true] %s423_s20  ;;  %s426_s23 = int_to_ptr.hbm [resolvable:$true] %s425_s23 }
   0xd   :  { %453 = vmatpush.msra.mxu2 %v127_v25  ;;  %243 = vperm.xlu2 %459, %v226_v26   ;;  %v227_v30 = vsel %vm219_vm13, 1, %v489_v3  ;;  %v304_v31 = vsel %vm296_vm14, 1, %v489_v3  ;;  %v299_v32 = vsel %vm291_vm15, 1, %v489_v3  ;;  %vm297_vm3 = vcmp.eq.s32.totalorder %v212_v14, 1 }
   0xe   :  { %234 = vperm.xlu0 %457, %v223_v12   ;;  %v305_v41 = vsel %vm297_vm3, 1, %v489_v3  ;;  %v490_v7 = vmov -1e+30   ;;  %v461_v12 = vld [vmem:[%s717_s5] ss:$0 sm:$0xff] }
   0xf   :  { %35 = vst.msk [vmem:[#allocation2] sm:$0xff] %vm34_vm2, %v490_v7 }
  0x13   :  { %437 = vmatmul.msk.f32.gmra.mxu0 %vm49_vm1, %v38_v15  ;;  %442 = vmatmul.msk.f32.gmra.mxu3 %vm49_vm1, %v43_v16 }
  0x14   :  { %252 = vperm.xlu1 %458, %v229_v23  }
  0x15   :  { %246 = vperm.xlu2 %459, %v227_v30  }
  0x16   :  { %249 = vperm.xlu0 %457, %v228_v17  }
  0x1b   :  { %438 = vmatmul.msk.f32.gmra.mxu0 %vm49_vm1, %v39_v18 }
  0x1c   :  { %314 = vperm.xlu1 %458, %v301_v27  }
  0x1d   :  { %308 = vperm.xlu2 %459, %v299_v32  }
  0x1e   :  { %311 = vperm.xlu0 %457, %v300_v19  }
  0x23   :  { %439 = vmatmul.msk.f32.gmra.mxu0 %vm49_vm1, %v40_v20  ;;  %vm294_vm1 = vcmp.eq.s32.totalorder %v570_v9, 1 }
  0x24   :  { %323 = vperm.xlu1 %458, %v304_v31   ;;  %v302_v36 = vsel %vm294_vm1, 1, %v489_v3 }
  0x25   :  { %317 = vperm.xlu2 %459, %v302_v36  }
  0x26   :  { %320 = vperm.xlu0 %457, %v303_v24  }
  0x2d   :  { %326 = vperm.xlu2 %459, %v305_v41  }
  0x2e   :  { %329 = vperm.xlu0 %457, %v306_v28  }
  0x67   :  { %v641_v63 = vpop.permute.xlu2 %243 }
  0x68   :  { %vm258_vm15 = vcmp.eq.s32.totalorder %v641_v63, 1 }
  0x6f   :  { %v247_v2 = vpop.permute.xlu2 %246 }
  0x70   :  { %vm259_vm11 = vcmp.eq.s32.totalorder %v247_v2, 1 }
  0x76   :  { %v639_v61 = vpop.permute.xlu1 %237 }
  0x77   :  { %v309_v6 = vpop.permute.xlu2 %308  ;;  %vm256_vm10 = vcmp.eq.s32.totalorder %v639_v61, 1 }
  0x78   :  { %v232_v60 = vpop.permute.xlu0 %231  ;;  %vm331_vm6 = vcmp.eq.s32.totalorder %v309_v6, 1 }
  0x79   :  { %vm254_vm4 = vcmp.eq.s32.totalorder %v232_v60, 1 }
  0x7e   :  { %v643_v0 = vpop.permute.xlu1 %240 }
  0x7f   :  { %v318_v13 = vpop.permute.xlu2 %317  ;;  %vm257_vm8 = vcmp.eq.s32.totalorder %v643_v0, 1 }
  0x80   :  { %v95_v34 = vpop.f32.mrf.mxu0  ;;  %v235_v62 = vpop.permute.xlu0 %234  ;;  %vm334_vm3 = vcmp.eq.s32.totalorder %v318_v13, 1 }
  0x81   :  { %v96_v35 = vadd.f32 %v460_v33, %v95_v34  ;;  %vm255_vm5 = vcmp.eq.s32.totalorder %v235_v62, 1 }
  0x83   :  { %v119_v37 = vmax.f32 %v96_v35, 0.0 }
  0x85   :  { %443 = vmatmul.msk.f32.vlgmr.msra.gmra.mxu1 %vm34_vm2, %v119_v37 }
  0x86   :  { %v110_v38 = vpop.f32.mrf.mxu3  ;;  %v647_v4 = vpop.permute.xlu1 %252 }
  0x87   :  { %v111_v39 = vadd.f32 %v460_v33, %v110_v38  ;;  %vm261_vm12 = vcmp.eq.s32.totalorder %v647_v4, 1  ;;  %v327_v27 = vpop.permute.xlu2 %326 }
  0x88   :  { %v98_v40 = vpop.f32.mrf.mxu0  ;;  %v645_v1 = vpop.permute.xlu0 %249  ;;  %vm337_vm13 = vcmp.eq.s32.totalorder %v327_v27, 1 }
  0x89   :  { %v124_v42 = vmax.f32 %v111_v39, 0.0  ;;  %v99_v43 = vadd.f32 %v460_v33, %v98_v40  ;;  %vm260_vm7 = vcmp.eq.s32.totalorder %v645_v1, 1 }
  0x8b   :  { %v120_v44 = vmax.f32 %v99_v43, 0.0  ;;  %448 = vmatmul.msk.f32.vlgmr.msra.gmra.mxu2 %vm34_vm2, %v124_v42 }
  0x8d   :  { %444 = vmatmul.msk.f32.gmra.mxu1 %vm34_vm2, %v120_v44 }
  0x8e   :  { %v113_v45 = vpop.f32.mrf.mxu3  ;;  %v650_v10 = vpop.permute.xlu1 %314 }
  0x8f   :  { %v114_v46 = vadd.f32 %v460_v33, %v113_v45 }
  0x90   :  { %v101_v47 = vpop.f32.mrf.mxu0  ;;  %v312_v5 = vpop.permute.xlu0 %311 }
  0x91   :  { %v125_v48 = vmax.f32 %v114_v46, 0.0  ;;  %v102_v49 = vadd.f32 %v460_v33, %v101_v47  ;;  %vm332_vm9 = vcmp.eq.s32.totalorder %v312_v5, 1 }
  0x93   :  { %v121_v50 = vmax.f32 %v102_v49, 0.0  ;;  %449 = vmatmul.msk.f32.gmra.mxu2 %vm34_vm2, %v125_v48 }
  0x95   :  { %445 = vmatmul.msk.f32.gmra.mxu1 %vm34_vm2, %v121_v50 }
  0x96   :  { %v116_v51 = vpop.f32.mrf.mxu3  ;;  %v324_v20 = vpop.permute.xlu1 %323 }
  0x97   :  { %v117_v52 = vadd.f32 %v460_v33, %v116_v51  ;;  %vm336_vm14 = vcmp.eq.s32.totalorder %v324_v20, 1 }
  0x98   :  { %v104_v53 = vpop.f32.mrf.mxu0  ;;  %v652_v11 = vpop.permute.xlu0 %320 }
  0x99   :  { %v126_v54 = vmax.f32 %v117_v52, 0.0  ;;  %v105_v55 = vadd.f32 %v460_v33, %v104_v53  ;;  %vm335_vm1 = vcmp.eq.s32.totalorder %v652_v11, 1 }
  0x9b   :  { %v122_v56 = vmax.f32 %v105_v55, 0.0  ;;  %450 = vmatmul.msk.f32.gmra.mxu2 %vm34_vm2, %v126_v54 }
  0x9d   :  { %446 = vmatmul.msk.f32.gmra.mxu1 %vm34_vm2, %v122_v56 }
  0xa0   :  { %v107_v57 = vpop.f32.mrf.mxu0  ;;  %v330_v26 = vpop.permute.xlu0 %329 }
  0xa1   :  { %v108_v58 = vadd.f32 %v460_v33, %v107_v57  ;;  %vm338_vm0 = vcmp.eq.s32.totalorder %v330_v26, 1 }
  0xa3   :  { %v123_v59 = vmax.f32 %v108_v58, 0.0  ;;  %v388_v58 = vld [vmem:[%s718_s6] sm:$0xff] }
  0xa4   :  { %411 = vmatpush.msrb.mxu2 %v388_v58 }
  0xa5   :  { %447 = vmatmul.msk.f32.gmra.mxu1 %vm34_vm2, %v123_v59 }
 0x102   :  { %v174_v3 = vpop.f32.mrf.mxu1 }
 0x103   :  { %v175_v15 = vadd.f32 %v461_v12, %v174_v3 }
 0x105   :  { %v198_v19 = vmax.f32 %v175_v15, 0.0 }
 0x107   :  { %v262_v28 = vsel %vm254_vm4, %v198_v19, -1e+30  ;;  %v339_v29 = vsel %vm331_vm6, %v198_v19, -1e+30  ;;  %vm722_vm4 = vcmp.eq.s32.totalorder %v650_v10, 1  ;;  %vm373_vm6 = vcmask 1042432  }
 0x108   :  { %v270_v38 = vsel %vm34_vm2, %v262_v28, -inf  ;;  %v347_v39 = vsel %vm34_vm2, %v339_v29, -inf }
 0x10a   :  { %v177_v8 = vpop.f32.mrf.mxu1 }
 0x10b   :  { %v178_v16 = vadd.f32 %v461_v12, %v177_v8 }
 0x10d   :  { %v199_v21 = vmax.f32 %v178_v16, 0.0 }
 0x10e   :  { %v189_v9 = vpop.f32.mrf.mxu2 }
 0x10f   :  { %v190_v17 = vadd.f32 %v461_v12, %v189_v9  ;;  %v263_v30 = vsel %vm255_vm5, %v199_v21, -1e+30  ;;  %v340_v41 = vsel %vm332_vm9, %v199_v21, -1e+30  ;;  %vm371_vm5 = vcmask 1041408  }
 0x110   :  { %v271_v40 = vsel %vm34_vm2, %v263_v30, -inf  ;;  %v348_v54 = vsel %vm34_vm2, %v340_v41, -inf  ;;  %vm723_vm9 = vcmask 1043456  }
 0x111   :  { %v203_v22 = vmax.f32 %v190_v17, 0.0 }
 0x112   :  { %v180_v14 = vpop.f32.mrf.mxu1 }
 0x113   :  { %v181_v31 = vadd.f32 %v461_v12, %v180_v14  ;;  %v267_v32 = vsel %vm259_vm11, %v203_v22, -1e+30  ;;  %v344_v33 = vsel %vm336_vm14, %v203_v22, -1e+30  ;;  %vm416_vm11 = vcmask 9216  }
 0x114   :  { %v276_v42 = vsel %vm34_vm2, %v267_v32, -inf  ;;  %v353_v43 = vsel %vm34_vm2, %v344_v33, -inf }
 0x115   :  { %v200_v44 = vmax.f32 %v181_v31, 0.0  ;;  %v277_v55 = vmax.f32 %v271_v40, %v276_v42  ;;  %v354_v59 = vmax.f32 %v348_v54, %v353_v43  ;;  %v462_v43 = vld [vmem:[%s719_s7] ss:$0 sm:$0xff] }
 0x116   :  { %v192_v18 = vpop.f32.mrf.mxu2 }
 0x117   :  { %v193_v23 = vadd.f32 %v461_v12, %v192_v18  ;;  %v264_v60 = vsel %vm256_vm10, %v200_v44, -1e+30  ;;  %v341_v62 = vsel %vm722_vm4, %v200_v44, -1e+30  ;;  %vm380_vm10 = vcmask 1046528  }
 0x118   :  { %v272_v8 = vsel %vm34_vm2, %v264_v60, -inf  ;;  %v349_v9 = vsel %vm34_vm2, %v341_v62, -inf }
 0x119   :  { %v204_v34 = vmax.f32 %v193_v23, 0.0 }
 0x11a   :  { %v183_v24 = vpop.f32.mrf.mxu1 }
 0x11b   :  { %v184_v25 = vadd.f32 %v461_v12, %v183_v24  ;;  %v268_v46 = vsel %vm260_vm7, %v204_v34, -1e+30  ;;  %v345_v47 = vsel %vm337_vm13, %v204_v34, -1e+30  ;;  %vm376_vm7 = vcmask 1044480  }
 0x11c   :  { %v278_v1 = vsel %vm34_vm2, %v268_v46, -inf  ;;  %v355_v2 = vsel %vm34_vm2, %v345_v47, -inf }
 0x11d   :  { %v201_v35 = vmax.f32 %v184_v25, 0.0  ;;  %v279_v13 = vmax.f32 %v272_v8, %v278_v1  ;;  %v356_v14 = vmax.f32 %v349_v9, %v355_v2 }
 0x11e   :  { %v195_v36 = vpop.f32.mrf.mxu2 }
 0x11f   :  { %v196_v37 = vadd.f32 %v461_v12, %v195_v36  ;;  %v265_v48 = vsel %vm257_vm8, %v201_v35, -1e+30  ;;  %v342_v50 = vsel %vm334_vm3, %v201_v35, -1e+30  ;;  %vm378_vm8 = vcmask 1045504  }
 0x120   :  { %v273_v3 = vsel %vm34_vm2, %v265_v48, -inf  ;;  %v350_v4 = vsel %vm34_vm2, %v342_v50, -inf }
 0x121   :  { %v205_v45 = vmax.f32 %v196_v37, 0.0  ;;  %v368_v37 = vld [vmem:[#allocation2] sm:$0xff] }
 0x122   :  { %v186_v49 = vpop.f32.mrf.mxu1 }
 0x123   :  { %v269_v51 = vsel %vm261_vm12, %v205_v45, -1e+30  ;;  %v346_v52 = vsel %vm338_vm0, %v205_v45, -1e+30  ;;  %v187_v53 = vadd.f32 %v461_v12, %v186_v49  ;;  %vm369_vm0 = vcmask 1040384  }
 0x124   :  { %v280_v56 = vsel %vm34_vm2, %v269_v51, -inf  ;;  %v357_v57 = vsel %vm34_vm2, %v346_v52, -inf }
 0x125   :  { %v202_v0 = vmax.f32 %v187_v53, 0.0  ;;  %v281_v5 = vmax.f32 %v273_v3, %v280_v56  ;;  %v358_v6 = vmax.f32 %v350_v4, %v357_v57 }
 0x127   :  { %v266_v7 = vsel %vm258_vm15, %v202_v0, -1e+30  ;;  %v343_v61 = vsel %vm335_vm1, %v202_v0, -1e+30  ;;  %v283_v17 = vmax.f32 %v279_v13, %v281_v5  ;;  %v360_v18 = vmax.f32 %v356_v14, %v358_v6 }
 0x128   :  { %v274_v10 = vsel %vm34_vm2, %v266_v7, -inf  ;;  %v351_v12 = vsel %vm34_vm2, %v343_v61, -inf }
 0x129   :  { %v275_v15 = vmax.f32 %v270_v38, %v274_v10  ;;  %v352_v16 = vmax.f32 %v347_v39, %v351_v12 }
 0x12b   :  { %v282_v19 = vmax.f32 %v275_v15, %v277_v55  ;;  %v359_v63 = vmax.f32 %v352_v16, %v354_v59 }
 0x12d   :  { %v284_v20 = vmax.f32 %v282_v19, %v283_v17  ;;  %v361_v21 = vmax.f32 %v359_v63, %v360_v18 }
 0x12f   :  { %v285_v11 = vrot.slane %v284_v20, 4  ;;  %v362_v22 = vrot.slane %v361_v21, 4 }
 0x131   :  { %v286_v23 = vmax.f32 %v284_v20, %v285_v11  ;;  %v363_v24 = vmax.f32 %v361_v21, %v362_v22 }
 0x133   :  { %v287_v25 = vrot.slane %v286_v23, 2  ;;  %v364_v26 = vrot.slane %v363_v24, 2 }
 0x135   :  { %v288_v27 = vmax.f32 %v286_v23, %v287_v25  ;;  %v365_v28 = vmax.f32 %v363_v24, %v364_v26 }
 0x137   :  { %v289_v29 = vrot.slane %v288_v27, 1  ;;  %v366_v30 = vrot.slane %v365_v28, 1 }
 0x139   :  { %v290_v31 = vmax.f32 %v288_v27, %v289_v29  ;;  %v367_v32 = vmax.f32 %v365_v28, %v366_v30 }
 0x13b   :  { %v370_v33 = vsel %vm369_vm0, %v290_v31, %v367_v32 }
 0x13c   :  { %v372_v34 = vsel %vm371_vm5, %v370_v33, -1e+30 }
 0x13d   :  { %v374_v35 = vsel %vm373_vm6, %v372_v34, -1e+30 }
 0x13e   :  { %v375_v36 = vsel %vm723_vm9, %v374_v35, -1e+30 }
 0x13f   :  { %v377_v38 = vsel %vm376_vm7, %v375_v36, -1e+30 }
 0x140   :  { %v379_v39 = vsel %vm378_vm8, %v377_v38, -1e+30 }
 0x141   :  { %v381_v40 = vsel %vm380_vm10, %v379_v39, -1e+30 }
 0x142   :  { %v382_v41 = vmax.f32 %v368_v37, %v381_v40 }
 0x144   :  { %383 = vst.msk [vmem:[#allocation2] sm:$0xff] %vm34_vm2, %v382_v41 }
 0x14b   :  { %v387_v42 = vld [vmem:[#allocation2] sm:$0xff] }
 0x14c   :  { %451 = vmatmul.msk.f32.vlgmr.msrb.gmra.mxu2 %vm34_vm2, %v387_v42 }
 0x1cf   :  { %v413_v44 = vpop.f32.mrf.mxu2 }
 0x1d0   :  { %v414_v45 = vadd.f32 %v462_v43, %v413_v44 }
 0x1d2   :  { %417 = vst.msk [vmem:[#allocation3] sm:$0x3] %vm416_vm11, %v414_v45 }
 0x1d3   :  { %428 = dma.vmem_to_hbm [thread:$0]  %s424_s20, 32, %s426_s23, [#allocation4]  }
 0x1d4   :  { %487 = dma.done.wait [#allocation4], 32  }
 0x1d5   :  { %488 = vsyncadd [#allocation4], 4294967264 }
 0x1d6   :  { %433 = vsyncpa [#allocation4], 1 }

</bundles_post_ra>
